<compile_context>
chip_gen: v7x
topology: tpu7x:2x2x1
jax: 0.10.0
libtpu: 0.0.40
codegen_flags: <defaults>
</compile_context>

<pallas_src>
import functools
import math

import jax
import jax.numpy as jnp
from jax import lax
from jax.experimental import pallas as pl
from jax.experimental.pallas import tpu as pltpu

NEG_INF = -1e30  # large-negative mask value (not -inf: keeps online softmax NaN-free)


def _pick_tile(dim: int, candidates) -> int:
    for c in candidates:
        if c <= dim and dim % c == 0:
            return c
    return dim


# --------------------------------------------------------------------------- #
# Tiled NT matmul: out[m, n] = sum_k a[m, k] * w[n, k]   (== a @ w.T)
# bf16 MXU inputs, f32 accumulation directly in the output block (no scratch).
# --------------------------------------------------------------------------- #
def _matmul_nt_kernel(a_ref, w_ref, o_ref):
    @pl.when(pl.program_id(2) == 0)
    def _():
        o_ref[...] = jnp.zeros_like(o_ref)

    o_ref[...] += lax.dot_general(
        a_ref[...].astype(jnp.bfloat16), w_ref[...].astype(jnp.bfloat16),
        dimension_numbers=(((1,), (1,)), ((), ())),
        preferred_element_type=jnp.float32)


def matmul_nt(a: jax.Array, w: jax.Array) -> jax.Array:
    """a: (M, K), w: (N, K) (PyTorch Linear weight). Returns f32 (M, N) = a @ w.T."""
    M, K = a.shape
    N, K2 = w.shape
    assert K == K2
    tn = _pick_tile(N, (512, 256, 128))
    tk = _pick_tile(K, (1024, 512, 256, 128))
    # Prefer >= 2 parallel output tiles so both v7x TensorCores get work.
    tm_cands = (512, 256, 128, 64, 32, 16, 8)
    tm = None
    if N // tn < 2:
        for c in tm_cands:
            if c <= M and M % c == 0 and M // c >= 2:
                tm = c
                break
    if tm is None:
        tm = _pick_tile(M, tm_cands)
    # Working set (double-buffered f32 blocks) stays < 16 MiB -> fits the v5e
    # default scoped-VMEM limit; no vmem_limit_bytes override needed.
    grid = (M // tm, N // tn, K // tk)
    return pl.pallas_call(
        _matmul_nt_kernel,
        out_shape=jax.ShapeDtypeStruct((M, N), jnp.float32),
        grid_spec=pltpu.PrefetchScalarGridSpec(
            num_scalar_prefetch=0,
            grid=grid,
            in_specs=[
                pl.BlockSpec((tm, tk), lambda i, j, k: (i, k)),
                pl.BlockSpec((tn, tk), lambda i, j, k: (j, k)),
            ],
            out_specs=pl.BlockSpec((tm, tn), lambda i, j, k: (i, j)),
        ),
        compiler_params=pltpu.CompilerParams(
            dimension_semantics=("parallel", "parallel", "arbitrary")),
    )(a, w)


# --------------------------------------------------------------------------- #
# RoPE + split kernel: qkv (B, T, 3C) -> q_rot, k_rot, v each (B, nh, T, hs).
# q/k arrive with the per-head RoPE pairs de-interleaved ([evens | odds]) and q
# pre-scaled by 1/sqrt(hs) (both folded into w_attn at parameter-prep time).
# Each q/k element is rotated exactly once; v passes through untouched.
# --------------------------------------------------------------------------- #
def _rope_split_kernel(qkv_ref, cos_ref, sin_ref, q_ref, k_ref, v_ref, *, n_head):
    C = qkv_ref.shape[-1] // 3
    hs = C // n_head
    h2 = hs // 2
    c = cos_ref[...]          # (Tt, h2)
    s = sin_ref[...]          # (Tt, h2)
    # TODO(synk): for very large n_head, switch this static unroll to a grid axis.
    for h in range(n_head):
        b0 = h * hs
        q1 = qkv_ref[0, :, b0:b0 + h2]
        q2 = qkv_ref[0, :, b0 + h2:b0 + hs]
        k1 = qkv_ref[0, :, C + b0:C + b0 + h2]
        k2 = qkv_ref[0, :, C + b0 + h2:C + b0 + hs]
        # two static-slice stores per tensor: no lane-dim concatenate / relayout
        q_ref[0, h, :, :h2] = (q1 * c - q2 * s).astype(q_ref.dtype)
        q_ref[0, h, :, h2:] = (q1 * s + q2 * c).astype(q_ref.dtype)
        k_ref[0, h, :, :h2] = (k1 * c - k2 * s).astype(k_ref.dtype)
        k_ref[0, h, :, h2:] = (k1 * s + k2 * c).astype(k_ref.dtype)
        v_ref[0, h, :, :] = qkv_ref[0, :, 2 * C + b0:2 * C + b0 + hs].astype(v_ref.dtype)


def rope_split(qkv, cos, sin, n_head):
    """qkv: (B, T, 3C); cos/sin: (>=T, hs//2). Returns q_rot, k_rot, v (B, nh, T, hs)."""
    B, T, C3 = qkv.shape
    C = C3 // 3
    hs = C // n_head
    h2 = hs // 2
    Tt = _pick_tile(T, (256, 128, 64, 32, 16, 8))
    grid = (B, T // Tt)
    kernel = functools.partial(_rope_split_kernel, n_head=n_head)
    out_sds = jax.ShapeDtypeStruct((B, n_head, T, hs), qkv.dtype)
    return pl.pallas_call(
        kernel,
        out_shape=(out_sds, out_sds, out_sds),
        grid_spec=pltpu.PrefetchScalarGridSpec(
            num_scalar_prefetch=0,
            grid=grid,
            in_specs=[
                pl.BlockSpec((1, Tt, C3), lambda b, t: (b, t, 0)),
                pl.BlockSpec((Tt, h2), lambda b, t: (t, 0)),
                pl.BlockSpec((Tt, h2), lambda b, t: (t, 0)),
            ],
            out_specs=[
                pl.BlockSpec((1, n_head, Tt, hs), lambda b, t: (b, 0, t, 0)),
                pl.BlockSpec((1, n_head, Tt, hs), lambda b, t: (b, 0, t, 0)),
                pl.BlockSpec((1, n_head, Tt, hs), lambda b, t: (b, 0, t, 0)),
            ],
        ),
        compiler_params=pltpu.CompilerParams(
            dimension_semantics=("parallel", "parallel")),
    )(qkv, cos, sin)


# --------------------------------------------------------------------------- #
# Flash attention kernel: q/k pre-rotated (q pre-scaled), online softmax,
# scalar tile classification to skip mask work / whole tiles.
# Grid: (B, n_head, T/Tq, T/Tk), kv axis innermost ("arbitrary").
# --------------------------------------------------------------------------- #
def _flash_attn_kernel(q_ref, k_ref, v_ref, mq_ref, mk_ref, o_ref,
                       m_scr, l_scr, acc_scr, *, t_text):
    ki = pl.program_id(3)
    Tq = q_ref.shape[2]
    Tk = k_ref.shape[2]
    q_start = pl.program_id(2) * Tq
    k_start = ki * Tk

    @pl.when(ki == 0)
    def _init():
        m_scr[...] = jnp.full_like(m_scr, NEG_INF)
        l_scr[...] = jnp.zeros_like(l_scr)
        acc_scr[...] = jnp.zeros_like(acc_scr)

    # ---- scalar tile classification (t_text = static y_mask length) --------
    causal_possible = k_start <= q_start + (Tq - 1)      # any (q,k) causally valid
    if t_text > 0:
        interact = causal_possible | ((k_start < t_text) & (q_start < t_text))
    else:
        interact = causal_possible
    fully_causal = (k_start + (Tk - 1)) <= q_start        # every (q,k) valid -> no mask

    @pl.when(interact)
    def _body():
        q = q_ref[0, 0].astype(jnp.bfloat16)               # (Tq, hs) rotated + scaled
        k = k_ref[0, 0].astype(jnp.bfloat16)               # (Tk, hs) rotated
        s = lax.dot_general(q, k, dimension_numbers=(((1,), (1,)), ((), ())),
                            preferred_element_type=jnp.float32)

        def online_update(scores):
            m_prev = m_scr[...]
            m_new = jnp.maximum(m_prev, jnp.max(scores, axis=-1, keepdims=True))
            alpha = jnp.exp(m_prev - m_new)
            p = jnp.exp(scores - m_new)
            l_scr[...] = alpha * l_scr[...] + jnp.sum(p, axis=-1, keepdims=True)
            acc_scr[...] = alpha * acc_scr[...] + lax.dot_general(
                p.astype(jnp.bfloat16), v_ref[0, 0].astype(jnp.bfloat16),
                dimension_numbers=(((1,), (0,)), ((), ())),
                preferred_element_type=jnp.float32)
            m_scr[...] = m_new

        @pl.when(fully_causal)
        def _no_mask():                                     # no iota / compare / where
            online_update(s)

        @pl.when(jnp.logical_not(fully_causal))
        def _masked():                                      # diagonal / text tiles only
            qpos = q_start + lax.broadcasted_iota(jnp.int32, (Tq, Tk), 0)
            kpos = k_start + lax.broadcasted_iota(jnp.int32, (Tq, Tk), 1)
            valid = kpos <= qpos
            if t_text > 0:
                text = (mq_ref[0] > 0.5) & (mk_ref[0] > 0.5)   # (Tq,1)&(1,Tk)->(Tq,Tk)
                valid = valid | text
            online_update(jnp.where(valid, s, NEG_INF))

    @pl.when(ki == pl.num_programs(3) - 1)
    def _finish():
        inv = pl.reciprocal(l_scr[...], approx=True)
        o_ref[0, 0] = (acc_scr[...] * inv).astype(o_ref.dtype)


def flash_attention(q, k, v, ym_q, ym_k, *, t_text):
    """q, k: (B, nh, T, hs) pre-rotated (q pre-scaled); v: (B, nh, T, hs);
    ym_q: (B, T, 1) float; ym_k: (B, 1, T) float; t_text: static text length."""
    B, nh, T, hs = q.shape
    Tq = _pick_tile(T, (512, 256, 128, 64, 32, 16, 8))   # large Tq: fewer K/V streams
    Tk = _pick_tile(T, (256, 128, 64, 32, 16, 8))        # Tk capped to limit live vregs
    grid = (B, nh, T // Tq, T // Tk)
    kernel = functools.partial(_flash_attn_kernel, t_text=t_text)
    return pl.pallas_call(
        kernel,
        out_shape=jax.ShapeDtypeStruct((B, nh, T, hs), q.dtype),
        grid_spec=pltpu.PrefetchScalarGridSpec(
            num_scalar_prefetch=0,
            grid=grid,
            in_specs=[
                pl.BlockSpec((1, 1, Tq, hs), lambda b, h, qi, ki: (b, h, qi, 0)),
                pl.BlockSpec((1, 1, Tk, hs), lambda b, h, qi, ki: (b, h, ki, 0)),
                pl.BlockSpec((1, 1, Tk, hs), lambda b, h, qi, ki: (b, h, ki, 0)),
                pl.BlockSpec((1, Tq, 1), lambda b, h, qi, ki: (b, qi, 0)),
                pl.BlockSpec((1, 1, Tk), lambda b, h, qi, ki: (b, 0, ki)),
            ],
            out_specs=pl.BlockSpec((1, 1, Tq, hs),
                                   lambda b, h, qi, ki: (b, h, qi, 0)),
            scratch_shapes=[
                pltpu.VMEM((Tq, 1), jnp.float32),    # running max
                pltpu.VMEM((Tq, 1), jnp.float32),    # running denom
                pltpu.VMEM((Tq, hs), jnp.float32),   # output accumulator
            ],
        ),
        compiler_params=pltpu.CompilerParams(
            dimension_semantics=("parallel", "parallel", "parallel", "arbitrary")),
    )(q, k, v, ym_q, ym_k)


# --------------------------------------------------------------------------- #
# Output projection consuming the flash output directly in (B, nh, T, hs)
# layout (per-head contraction), writing (B, T, C). Removes the XLA output
# transpose entirely.
# --------------------------------------------------------------------------- #
def _proj_heads_kernel(y_ref, w_ref, o_ref, *, n_head):
    hs = y_ref.shape[-1]
    acc = jnp.zeros(o_ref.shape[1:], jnp.float32)
    # TODO(synk): tile the contraction (heads / C) for very large n_embd.
    for h in range(n_head):
        a_h = y_ref[0, h].astype(jnp.bfloat16)                    # (tm, hs)
        w_h = w_ref[:, h * hs:(h + 1) * hs].astype(jnp.bfloat16)  # (tn, hs)
        acc = acc + lax.dot_general(
            a_h, w_h, dimension_numbers=(((1,), (1,)), ((), ())),
            preferred_element_type=jnp.float32)
    o_ref[0] = acc.astype(o_ref.dtype)


def proj_from_heads(y, w):
    """y: (B, nh, T, hs); w: (C, C) PyTorch Linear weight. Returns (B, T, C) = y @ w.T."""
    B, nh, T, hs = y.shape
    C = nh * hs
    N, K = w.shape
    assert N == C and K == C
    tm = _pick_tile(T, (512, 256, 128, 64, 32, 16, 8))
    tn = _pick_tile(N, (512, 256, 128))
    grid = (B, T // tm, N // tn)
    kernel = functools.partial(_proj_heads_kernel, n_head=nh)
    return pl.pallas_call(
        kernel,
        out_shape=jax.ShapeDtypeStruct((B, T, N), jnp.float32),
        grid_spec=pltpu.PrefetchScalarGridSpec(
            num_scalar_prefetch=0,
            grid=grid,
            in_specs=[
                pl.BlockSpec((1, nh, tm, hs), lambda b, i, j: (b, 0, i, 0)),
                pl.BlockSpec((tn, C), lambda b, i, j: (j, 0)),
            ],
            out_specs=pl.BlockSpec((1, tm, tn), lambda b, i, j: (b, i, j)),
        ),
        compiler_params=pltpu.CompilerParams(
            dimension_semantics=("parallel", "parallel", "parallel")),
    )(y, w)


# --------------------------------------------------------------------------- #
# Parameter-load-time preparation + module glue
# --------------------------------------------------------------------------- #
def build_rope_cos_sin(seq_len: int, n_elem: int):
    theta = 1.0 / (10000.0 ** (jnp.arange(0, n_elem, 2, dtype=jnp.float32) / n_elem))
    seq_idx = jnp.arange(seq_len, dtype=jnp.float32)
    idx_theta = jnp.outer(seq_idx, theta)            # (seq_len, n_elem//2)
    return jnp.cos(idx_theta), jnp.sin(idx_theta)


def prepare_attn_weight(w_attn, n_head):
    """Fold the per-head RoPE even/odd de-interleave into the q/k rows of w_attn
    and the 1/sqrt(hs) score scale into the q rows.  Done ONCE at load time."""
    C3, C = w_attn.shape
    assert C3 == 3 * C and C % n_head == 0
    hs = C // n_head
    assert hs % 2 == 0
    head_idx = jnp.arange(C, dtype=jnp.int32).reshape(n_head, hs // 2, 2)
    perm = jnp.concatenate([head_idx[..., 0], head_idx[..., 1]], axis=-1).reshape(C)
    row_perm = jnp.concatenate(
        [perm, C + perm, 2 * C + jnp.arange(C, dtype=jnp.int32)])
    w = w_attn[row_perm]
    w = w.at[:C].multiply(1.0 / math.sqrt(hs))
    return w


def length_causal_self_attention(x, y_mask, w_attn_prepped, w_proj, cos, sin, n_head):
    """x: (B, T, C) f32; y_mask: (B, Ty) bool; w_attn_prepped from prepare_attn_weight;
    w_proj: (C, C) PyTorch Linear convention; cos/sin: (>=T, hs//2) RoPE tables."""
    B, T, C = x.shape
    assert C % n_head == 0
    Ty = y_mask.shape[1]
    assert Ty <= T
    assert cos.shape[0] >= T

    # fused qkv projection (tiled NT matmul, bf16 MXU, f32 accum)
    qkv = matmul_nt(x.reshape(B * T, C), w_attn_prepped).reshape(B, T, 3 * C)

    # RoPE + head split in one Pallas pass (no XLA split/transpose, K rotated once)
    q, k, v = rope_split(qkv, cos, sin, n_head)

    # y_mask fed as O(T) row/col vectors; mask built in-kernel only where needed
    ym = jnp.pad(y_mask, ((0, 0), (0, T - Ty))).astype(jnp.float32)   # (B, T)
    y = flash_attention(q, k, v, ym[:, :, None], ym[:, None, :], t_text=Ty)

    # output projection directly from the head layout -> (B, T, C)
    return proj_from_heads(y, w_proj)


# --------------------------------------------------------------------------- #
# Pure-JAX reference (mirrors the PyTorch module exactly) for validation
# --------------------------------------------------------------------------- #
def reference(x, y_mask, w_attn, w_proj, n_head, block_size):
    B, T, C = x.shape
    hs = C // n_head
    h2 = hs // 2
    qkv = x @ w_attn.T
    q, k, v = jnp.split(qkv, 3, axis=2)
    q = q.reshape(B, T, n_head, hs).transpose(0, 2, 1, 3)
    k = k.reshape(B, T, n_head, hs).transpose(0, 2, 1, 3)
    v = v.reshape(B, T, n_head, hs).transpose(0, 2, 1, 3)

    cos_full, sin_full = build_rope_cos_sin(block_size, hs)
    cos, sin = cos_full[:T][None, None], sin_full[:T][None, None]

    def rope(t):
        tp = t.reshape(B, n_head, T, h2, 2)
        re = tp[..., 0] * cos - tp[..., 1] * sin
        im = tp[..., 0] * sin + tp[..., 1] * cos
        return jnp.stack([re, im], axis=-1).reshape(B, n_head, T, hs)

    q, k = rope(q), rope(k)

    Ty = y_mask.shape[1]
    causal = jnp.tril(jnp.ones((T, T), dtype=bool))[None, :, :]
    text = (y_mask[:, :, None] & y_mask[:, None, :])
    text = jnp.pad(text, ((0, 0), (0, T - Ty), (0, T - Ty)), constant_values=False)
    attn_mask = jnp.logical_or(causal, text)[:, None, :, :]

    scores = jnp.einsum("bhqd,bhkd->bhqk", q, k) / math.sqrt(hs)
    scores = jnp.where(attn_mask, scores, -jnp.inf)
    attn = jax.nn.softmax(scores, axis=-1)
    y = jnp.einsum("bhqk,bhkd->bhqd", attn, v)
    y = y.transpose(0, 2, 1, 3).reshape(B, T, C)
    return y @ w_proj.T


# --------------------------------------------------------------------------- #
if __name__ == "__main__":
    def run_case(B, T, C, n_head, block_size, Ty, seed):
        key = jax.random.PRNGKey(seed)
        kx, ka, kp, km = jax.random.split(key, 4)
        x = jax.random.normal(kx, (B, T, C), dtype=jnp.float32)
        w_attn = 0.02 * jax.random.normal(ka, (3 * C, C), dtype=jnp.float32)
        w_proj = 0.02 * jax.random.normal(kp, (C, C), dtype=jnp.float32)
        y_mask = jax.random.bernoulli(km, 0.6, (B, Ty))
        hs = C // n_head

        # parameter-load-time prep (done once, not per forward call)
        w_attn_p = prepare_attn_weight(w_attn, n_head)
        cos, sin = build_rope_cos_sin(block_size, hs)

        out = length_causal_self_attention(x, y_mask, w_attn_p, w_proj,
                                           cos, sin, n_head)
        out = jax.block_until_ready(out)
        ref = reference(x, y_mask, w_attn, w_proj, n_head, block_size)
        assert out.shape == (B, T, C)
        err = jnp.max(jnp.abs(out - ref))
        # bf16 MXU inputs + approx reciprocal -> tolerances slightly loosened vs f32
        assert jnp.allclose(out, ref, atol=1e-2, rtol=1e-2), \
            f"mismatch vs reference (max abs err {err})"

    # small config consistent with the module (n_embd % n_head == 0, even head size)
    run_case(B=2, T=8, C=32, n_head=4, block_size=16, Ty=5, seed=0)
    # larger config exercising multi-tile flash loop, tile-skipping and tiled matmuls
    run_case(B=2, T=256, C=128, n_head=2, block_size=256, Ty=100, seed=1)

    print("KERNEL_OK")
</pallas_src>

<mosaic_0001>
module attributes {stable_mosaic.version = 11 : i64} {
  func.func @_matmul_nt_kernel(%arg0: i32, %arg1: i32, %arg2: i32, %arg3: memref<8x32xf32, #tpu.memory_space<vmem>>, %arg4: memref<96x32xf32, #tpu.memory_space<vmem>>, %arg5: memref<8x96xf32, #tpu.memory_space<vmem>>) attributes {dimension_semantics = [#tpu.dimension_semantics<parallel>, #tpu.dimension_semantics<parallel>, #tpu.dimension_semantics<arbitrary>], iteration_bounds = array<i64: 2, 1, 1>, scalar_prefetch = 0 : i64, scratch_operands = 0 : i64, tpu.core_type = #tpu.core_type<tc>, window_params = [{transform_indices = @transform_0, window_bounds = array<i64: 8, 32>}, {transform_indices = @transform_1, window_bounds = array<i64: 96, 32>}, {transform_indices = @transform_2, window_bounds = array<i64: 8, 96>}]} {
    %c0_i32 = arith.constant 0 : i32
    %0 = arith.cmpi eq, %arg2, %c0_i32 : i32
    %1 = arith.extui %0 : i1 to i32
    %c0_i32_0 = arith.constant 0 : i32
    %2 = arith.cmpi ne, %1, %c0_i32_0 : i32
    scf.if %2 {
      %cst_8 = arith.constant 0.000000e+00 : f32
      %11 = vector.broadcast %cst_8 : f32 to vector<8x96xf32>
      %c0_9 = arith.constant 0 : index
      %c0_10 = arith.constant 0 : index
      %12 = vector.load %arg5[%c0_9, %c0_10] : memref<8x96xf32, #tpu.memory_space<vmem>>, vector<8x96xf32>
      tpu.vector_store %arg5[%c0_9, %c0_10], %11 {strides = array<i32>} : memref<8x96xf32, #tpu.memory_space<vmem>>, vector<8x96xf32>,
    } else {
    }
    %c0 = arith.constant 0 : index
    %c0_1 = arith.constant 0 : index
    %3 = vector.load %arg5[%c0, %c0_1] : memref<8x96xf32, #tpu.memory_space<vmem>>, vector<8x96xf32>
    %c0_2 = arith.constant 0 : index
    %c0_3 = arith.constant 0 : index
    %4 = vector.load %arg3[%c0_2, %c0_3] : memref<8x32xf32, #tpu.memory_space<vmem>>, vector<8x32xf32>
    %5 = arith.truncf %4 : vector<8x32xf32> to vector<8x32xbf16>
    %c0_4 = arith.constant 0 : index
    %c0_5 = arith.constant 0 : index
    %6 = vector.load %arg4[%c0_4, %c0_5] : memref<96x32xf32, #tpu.memory_space<vmem>>, vector<96x32xf32>
    %7 = arith.truncf %6 : vector<96x32xf32> to vector<96x32xbf16>
    %cst = arith.constant dense<0.000000e+00> : vector<8x96xf32>
    %8 = tpu.matmul %5, %7, %cst {dimension_numbers = #tpu.dot_dimension_numbers<[1], [1], [0], [0], [0, 0, 1, 0], [], []>} : vector<8x32xbf16>, vector<96x32xbf16>, vector<8x96xf32> -> vector<8x96xf32>
    %9 = arith.addf %3, %8 : vector<8x96xf32>
    %c0_6 = arith.constant 0 : index
    %c0_7 = arith.constant 0 : index
    %10 = vector.load %arg5[%c0_6, %c0_7] : memref<8x96xf32, #tpu.memory_space<vmem>>, vector<8x96xf32>
    tpu.vector_store %arg5[%c0_6, %c0_7], %9 {strides = array<i32>} : memref<8x96xf32, #tpu.memory_space<vmem>>, vector<8x96xf32>,
    return
  }
  func.func @transform_0(%arg0: i32, %arg1: i32, %arg2: i32) -> (i32, i32) {
    %c0_i32 = arith.constant 0 : i32
    return %arg0, %arg2 : i32, i32
  }
  func.func @transform_1(%arg0: i32, %arg1: i32, %arg2: i32) -> (i32, i32) {
    %c0_i32 = arith.constant 0 : i32
    return %arg1, %arg2 : i32, i32
  }
  func.func @transform_2(%arg0: i32, %arg1: i32, %arg2: i32) -> (i32, i32) {
    %c0_i32 = arith.constant 0 : i32
    return %arg0, %arg1 : i32, i32
  }
}

</mosaic_0001>

<bundles_post_ra>
// kernel: tpu_custom_call.1
= control target key start
LH: loop header
LB: loop body
LE: loop exit
PB: predicated region body
PF: predicated region fallthrough
CT: control target
= control target key end

     0   :  { %7 = vsyncpa [#allocation3], 0  ;;  %s762_s0 = inlined_call_operand.vmem [shape: f32[16,32], index: 0, kind: input, shape index: {}]   ;;  %s763_s1 = inlined_call_operand.vmem [shape: f32[96,32], index: 1, kind: input, shape index: {}]   ;;  %s764_s2 = inlined_call_operand.hbm [shape: f32[16,96], index: 2, kind: output, shape index: {}]  }
   0x1   :  { %9 = vsyncpa [#allocation3 + $0x1], 0  ;;  %s595_s9 = smov 0   ;;  %s597_s10 = smov 0  }
   0x2   :  { %s599_s11 = smov 0   ;;  %s601_s12 = smov 0  }
   0x3   :  { %s603_s13 = smov 0   ;;  %s605_s14 = smov 0  }
   0x4 LB: > { %s404_s15 = sadd.s32 4294967295, %s575_s14   ;;  %s405_s16 = sadd.s32 4294967294, %s575_s14   ;;  %s575_s14 = sphi %s605_s14, %s15_s14   ;;  %s571_s13 = sphi %s603_s13, %s771_s13   ;;  %s567_s12 = sphi %s601_s12, %s770_s12   ;;  %s563_s11 = sphi %s599_s11, %s769_s11   ;;  %s559_s10 = sphi %s597_s10, %s768_s10   ;;  %s555_s9 = sphi %s595_s9, %s767_s9  }
   0x5   : > { %s34_s17 = sadd.s32 1, %s571_s13  ;;  %s99_s18 = sadd.s32 1, %s563_s11 }
   0x6   : > { %p36_p0 = scmp.ge.s32.totalorder %s34_s17, 2  ;;  %p109_p1 = scmp.ne.s32.totalorder %s563_s11, %s559_s10 }
   0x7   : > { %p110_p2 = scmp.eq.s32.totalorder %s404_s15, 1  ;;  %p115_p3 = scmp.ne.s32.totalorder %s559_s10, %s555_s9 }
   0x8   : > { %s773_s17 = smov (%p36_p0, %s34_s17), 0  ;;  %p116_p5 = scmp.eq.s32.totalorder %s405_s16, 1 }
   0x9   : > { %p635_p4 = por %p110_p2, %p109_p1  ;;  %s94_s20 = ssub.s32 %s571_s13, %s773_s17 }
   0xa   : > { %p409_p6 = scmp.ge.s32.totalorder %s575_s14, 1  ;;  %p97_p7 = scmp.eq.s32.totalorder %s94_s20, 0 }
   0xb   : > { %p642_p8 = por %p116_p5, %p115_p3  ;;  %p156_p9 = scmp.lt.s32.totalorder %s575_s14, 3 }
   0xc   : > { %s648_s22 = scalar_select %p97_p7, %s563_s11, %s99_s18  }
   0xd   : > { %p157_p10 = pnand %p409_p6, %p156_p9 }
   0xe   : > { %v214_v0 = vld [vmem:[%s763_s1] sm:$0xff] (!%p157_p10)  ;;  %v215_v1 = vld [vmem:[%s763_s1 + $0x8] sm:$0xff] (!%p157_p10)  ;;  %vm232_vm0 = vcmask (!%p157_p10), 261120   ;;  %v577_v2 = vmov (!%p157_p10), 0.0   ;;  %vm578_vm1 = vmmov (!%p157_p10), 0   ;;  %s185_s27 = sand.u32 (!%p157_p10), 1, %s559_s10  }
   0xf   : > { %160 = sbr.rel (%p157_p10) target bundleno = 293 (0x125), region = 28  ;;  %424 = vmatprep.subr.bf16.mxu0 (!%p157_p10), %v577_v2  ;;  %v226_v3 = vpack.c.bf16 (!%p157_p10), %v215_v1, %v214_v0  ;;  %436 = vmatprep.mubr.msk.bf16.mxu0 (!%p157_p10), %vm578_vm1, %v577_v2  ;;  %v216_v4 = vld [vmem:[%s763_s1 + $0x10] sm:$0xff] (!%p157_p10)  ;;  %v217_v5 = vld [vmem:[%s763_s1 + $0x18] sm:$0xff] (!%p157_p10)  ;;  %s410_s4 = sshll.u32 (!%p157_p10), %s185_s27, 3  ;;  %vm209_vm2 = vcmask (!%p157_p10), 785408   ;;  %v218_v9 = vld [vmem:[%s763_s1 + $0x20] sm:$0xff] (!%p157_p10) }
  0x10   : > { %v227_v7 = vpack.c.bf16 (!%p157_p10), %v217_v5, %v216_v4  ;;  %s666_s5 = scalar_lea.vmem (!%p157_p10), [#allocation2], %s410_s4  ;;  %v219_v10 = vld [vmem:[%s763_s1 + $0x28] sm:$0xff] (!%p157_p10)  ;;  %v220_v13 = vld [vmem:[%s763_s1 + $0x30] sm:$0xff] (!%p157_p10)  ;;  %v221_v14 = vld [vmem:[%s763_s1 + $0x38] sm:$0xff] (!%p157_p10)  ;;  %p188_p11 = scmp.lt.s32.totalorder (!%p157_p10), %s567_s12, 1 }
  0x11   : > { %v237_v6 = vsel (!%p157_p10), %vm232_vm0, %v226_v3, 0  ;;  %210 = vst.msk [vmem:[%s666_s5] sm:$0xff] (!%p157_p10), %vm209_vm2, %v577_v2  ;;  %v228_v11 = vpack.c.bf16 (!%p157_p10), %v219_v10, %v218_v9  ;;  %v229_v15 = vpack.c.bf16 (!%p157_p10), %v221_v14, %v220_v13  ;;  %v222_v17 = vld [vmem:[%s763_s1 + $0x40] sm:$0xff] (!%p157_p10)  ;;  %v223_v18 = vld [vmem:[%s763_s1 + $0x48] sm:$0xff] (!%p157_p10)  ;;  %v224_v21 = vld [vmem:[%s763_s1 + $0x50] sm:$0xff] (!%p157_p10)  ;;  %s414_s18 = sshll.u32 (!%p157_p10), %s567_s12, 7 }
  0x12   : > { %425 = vmatpush3.bf16.xpose.msra.mxu0 (!%p157_p10), %v237_v6  ;;  %v240_v8 = vsel (!%p157_p10), %vm232_vm0, %v227_v7, 0  ;;  %v230_v19 = vpack.c.bf16 (!%p157_p10), %v223_v18, %v222_v17  ;;  %v225_v22 = vld [vmem:[%s763_s1 + $0x58] sm:$0xff] (!%p157_p10)  ;;  %s312_s20 = sshll.u32 (!%p157_p10), %s666_s5, 4  ;;  %s711_s25 = scalar_lea.hbm (!%p157_p10), %s764_s2, %s414_s18  ;;  %s713_s20 = int_to_ptr.vmem [resolvable:$true] %s312_s20 }
  0x13   : > { %426 = vmatprep.subr.bf16.mxu0 (!%p157_p10), %v577_v2  ;;  %v243_v12 = vsel (!%p157_p10), %vm232_vm0, %v228_v11, 0  ;;  %v246_v16 = vsel (!%p157_p10), %vm232_vm0, %v229_v15, 0  ;;  %v231_v23 = vpack.c.bf16 (!%p157_p10), %v225_v22, %v224_v21  ;;  %s497_s26 = scalar_lea.vmem (!%p157_p10), %s713_s20, 128  ;;  %s579_s28 = smov (!%p157_p10), [#allocation2]  }
  0x14   : > { %v249_v20 = vsel (!%p157_p10), %vm232_vm0, %v230_v19, 0  ;;  %p498_p12 = scmp.ne.s32.totalorder (!%p157_p10), %s713_s20, %s497_s26  ;;  %s501_s29 = sshll.u32 (!%p157_p10), %s579_s28, 4  ;;  %s502_s29 = int_to_ptr.vmem [resolvable:$false] %s501_s29 }
  0x15   : > { %v252_v24 = vsel (!%p157_p10), %vm232_vm0, %v231_v23, 0  ;;  %s503_s30 = scalar_lea.vmem (!%p157_p10), %s502_s29, 256  ;;  %p504_p1 = scmp.lt.s32.totalorder (!%p157_p10), %s713_s20, %s502_s29 }
  0x16   : > { %s189_s6 = scalar_select %p188_p11, %s567_s12, 1 }
  0x17   : > { %s298_s12 = scalar_lea.sflag [#allocation3], %s185_s27  ;;  %p499_p13 = pnand %p498_p12, %p635_p4 }
  0x18   : > { %s411_s7 = sshll.u32 %s189_s6, 3  ;;  %v211_v27 = vld [vmem:[%s666_s5] sm:$0xff]  ;;  %p505_p2 = scmp.lt.s32.totalorder %s503_s30, %s497_s26 }
  0x19   : > { %s194_s16 = scalar_lea.vmem %s762_s0, %s411_s7  ;;  %p500_p0 = pneg %p499_p13 }
  0x1a   : > { %427 = vmatpush3.bf16.xpose.msra.mxu0 %v240_v8  ;;  %v212_v25 = vld [vmem:[%s194_s16] sm:$0xff]  ;;  %p506_p3 = por %p505_p2, %p504_p1 }
  0x1b   : > { %428 = vmatprep.subr.bf16.mxu0 %v577_v2  ;;  %v213_v26 = vpack.c.bf16 %v212_v25, %v212_v25 }
  0x1c   : > { %p507_p5 = pnand %p506_p3, %p500_p0 }
  0x22   : > { %429 = vmatpush3.bf16.xpose.msra.mxu0 %v243_v12 }
  0x23   : > { %430 = vmatprep.subr.bf16.mxu0 %v577_v2 }
  0x2a   : > { %431 = vmatpush3.bf16.xpose.msra.mxu0 %v246_v16 }
  0x2b   : > { %432 = vmatprep.subr.bf16.mxu0 %v577_v2 }
  0x32   : > { %433 = vmatpush3.bf16.xpose.msra.mxu0 %v249_v20 }
  0x33   : > { %434 = vmatprep.subr.bf16.mxu0 %v577_v2 }
  0x3a   : > { %435 = vmatpush3.bf16.xpose.msra.mxu0 %v252_v24 }
  0x41   : > { %437 = vmatmul.mubr.msk.bf16.vlgmr.msra.gmra.mrb[0].mxu0 %vm232_vm0, %v213_v26 }
 0x114   : > { %v288_v28 = vpop.f32.mrb[0].mxu0 }
 0x115   : > { %v294_v29 = vadd.f32 %v288_v28, %v211_v27  ;;  %v438_v30 = vpop.f32.mrb[1].mxu0 }
 0x116   : > { %v291_v31 = vpop.f32.mrb[2].mxu0 }
 0x117   : > { %296 = vst.msk [vmem:[%s666_s5] sm:$0xff] %vm209_vm2, %v294_v29  ;;  %v439_v32 = vpop.f32.mrb[3].mxu0 }
 0x118   : > { %510 = shalt.err (!%p507_p5)
}
 0x119   : > { %s511_s27 = scalar_lea.hbm %s711_s25, 128  ;;  %s515_s4 = scalar_lea.hbm %s764_s2, 256 }
 0x11a   : > { %p512_p6 = scmp.ne.s32.totalorder %s711_s25, %s511_s27  ;;  %p516_p10 = scmp.lt.u32.totalorder %s711_s25, %s764_s2 }
 0x11b   : > { %p517_p11 = scmp.lt.u32.totalorder %s515_s4, %s511_s27  ;;  %p519_p13 = scmp.lt.u32.totalorder %s511_s27, %s711_s25 }
 0x11c   : > { %p513_p7 = pnand %p512_p6, %p635_p4 }
 0x11d   : > { %p518_p12 = por %p517_p11, %p516_p10 }
 0x11e   : > { %p514_p9 = pneg %p513_p7 }
 0x11f   : > { %p520_p0 = por %p519_p13, %p518_p12 }
 0x121   : > { %p521_p1 = pnand %p520_p0, %p514_p9 }
 0x123   : > { %524 = shalt.err (!%p521_p1)
}
 0x124   : > { %440 = dma.vmem_to_hbm [thread:$0]  (%p635_p4), %s713_s20, 128, %s711_s25, %s298_s12  }
 0x125 PF: > { %p446_p2 = scmp.ge.s32.totalorder %s575_s14, 2  ;;  %s324_s8 = sand.u32 1, %s555_s9  }
 0x126   : > { %s325_s15 = scalar_lea.sflag [#allocation3], %s324_s8 }
 0x127   : > { %p443_p3 = pnand %p446_p2, %p642_p8 }
 0x129   : > { %550 = dma.done.wait (!%p443_p3), %s325_s15, 128  }
 0x12a   : > { %552 = vsyncadd (!%p443_p3), %s325_s15, 4294967168  ;;  %s15_s14 = sadd.s32 1, %s575_s14   ;;  %s767_s9 = smov %s559_s10 }
 0x12b   : > { %p12_p5 = scmp.ge.s32.totalorder %s15_s14, 4   ;;  %s768_s10 = smov %s563_s11 }
 0x12c   : > { %s769_s11 = smov %s648_s22  ;;  %s770_s12 = smov %s571_s13 }
 0x12d   : > { %s771_s13 = smov %s773_s17  ;;  %14 = sbr.rel (!%p12_p5) target bundleno = 4 (0x4), region = 70 }
 0x134   :  { %330 = vsyncpa [#allocation3], 1 }
 0x135   :  { %332 = vsyncpa [#allocation3 + $0x1], 1 }

</bundles_post_ra>
